<compile_context>
chip_gen: v6e
topology: v6e:2x2x1
jax: 0.10.0
libtpu: 0.0.40
codegen_flags: <defaults>
</compile_context>

<pallas_src>
import functools

import jax
import jax.numpy as jnp
from jax.experimental import pallas as pl
from jax.experimental.pallas import tpu as pltpu


def _round_up(x, m):
    return ((x + m - 1) // m) * m


# ---------------------------------------------------------------------------
# Pallas kernel body: one fused SAGEConv layer (+ optional ReLU)
# ---------------------------------------------------------------------------
def _sage_body(a_ref, s_ref, xr_ref, inv_ref, wl_ref, wr_ref, b_ref, o_ref,
               acc_ref, root_ref, *, apply_relu):
    k = pl.program_id(1)

    @pl.when(k == 0)
    def _():
        acc_ref[...] = jnp.zeros_like(acc_ref)
        # Root term + bias computed once per row block; hidden under the
        # pipelined k loop instead of the final epilogue.
        root_ref[...] = (
            jnp.dot(xr_ref[...], wr_ref[...],
                    preferred_element_type=jnp.float32) + b_ref[...])

    # Neighbor-count aggregation over this contraction tile.  A is stored as
    # int8 counts in HBM (1 B/elt); cast to bf16 in VMEM and fed to the MXU.
    acc_ref[...] += jnp.dot(a_ref[...].astype(jnp.bfloat16), s_ref[...],
                            preferred_element_type=jnp.float32)

    @pl.when(k == pl.num_programs(1) - 1)
    def _():
        # Per-row 1/deg scale turns the neighbor sum into the mean.
        neigh = acc_ref[...] * inv_ref[...]
        if wl_ref is not None:
            # bf16 epilogue projection (f32 MXU matmuls are multi-pass/slow).
            neigh = jnp.dot(neigh.astype(jnp.bfloat16), wl_ref[...],
                            preferred_element_type=jnp.float32)
        out = root_ref[...] + neigh
        if apply_relu:
            out = jnp.maximum(out, 0.0)
        o_ref[...] = out.astype(o_ref.dtype)


def _sage_kernel_proj(a_ref, s_ref, xr_ref, inv_ref, wl_ref, wr_ref, b_ref,
                      o_ref, acc_ref, root_ref, *, apply_relu):
    _sage_body(a_ref, s_ref, xr_ref, inv_ref, wl_ref, wr_ref, b_ref, o_ref,
               acc_ref, root_ref, apply_relu=apply_relu)


def _sage_kernel_preproj(a_ref, s_ref, xr_ref, inv_ref, wr_ref, b_ref,
                         o_ref, acc_ref, root_ref, *, apply_relu):
    _sage_body(a_ref, s_ref, xr_ref, inv_ref, None, wr_ref, b_ref, o_ref,
               acc_ref, root_ref, apply_relu=apply_relu)


# ---------------------------------------------------------------------------
# Wrapper: one SAGEConv layer on padded operands
# ---------------------------------------------------------------------------
def sage_conv(counts, inv_deg, x, w_l, w_r, b, *, apply_relu, out_dtype,
              project_in_epilogue, tm, tk):
    """counts: (Np, Np) int8 neighbor counts; inv_deg: (Np, 1) f32 row scale.
    x: (Np, Fin_p) bf16; w_l/w_r: (Fin_p, Fout_p) bf16; b: (1, Fout_p) f32."""
    n_pad = counts.shape[0]
    fin_p = x.shape[1]
    fout_p = w_l.shape[1]
    assert n_pad % tm == 0 and n_pad % tk == 0

    if project_in_epilogue:
        stream = x                       # acc = A @ X ; epilogue applies W_l
        f_stream = fin_p
    else:
        # Pre-project once outside the kernel: O(N*Fin*Fout) << O(N^2*F).
        stream = jnp.dot(x, w_l,
                         preferred_element_type=jnp.float32).astype(jnp.bfloat16)
        f_stream = fout_p

    grid = (n_pad // tm, n_pad // tk)

    in_specs = [
        pl.BlockSpec((tm, tk), lambda i, k: (i, k)),          # A counts (int8)
        pl.BlockSpec((tk, f_stream), lambda i, k: (k, 0)),    # streamed X (or X@Wl)
        pl.BlockSpec((tm, fin_p), lambda i, k: (i, 0)),       # X row block (root)
        pl.BlockSpec((tm, 1), lambda i, k: (i, 0)),           # 1/deg row scale
    ]
    operands = [counts, stream, x, inv_deg]
    if project_in_epilogue:
        in_specs.append(pl.BlockSpec((fin_p, fout_p), lambda i, k: (0, 0)))  # W_l
        operands.append(w_l)
        kernel = functools.partial(_sage_kernel_proj, apply_relu=apply_relu)
    else:
        kernel = functools.partial(_sage_kernel_preproj, apply_relu=apply_relu)
    in_specs += [
        pl.BlockSpec((fin_p, fout_p), lambda i, k: (0, 0)),   # W_r
        pl.BlockSpec((1, fout_p), lambda i, k: (0, 0)),       # bias (f32)
    ]
    operands += [w_r, b]

    return pl.pallas_call(
        kernel,
        out_shape=jax.ShapeDtypeStruct((n_pad, fout_p), out_dtype),
        grid=grid,
        in_specs=in_specs,
        out_specs=pl.BlockSpec((tm, fout_p), lambda i, k: (i, 0)),
        scratch_shapes=[
            pltpu.VMEM((tm, f_stream), jnp.float32),   # neighbor-sum accumulator
            pltpu.VMEM((tm, fout_p), jnp.float32),     # root term + bias
        ],
        compiler_params=pltpu.CompilerParams(
            dimension_semantics=("parallel", "arbitrary"),
            vmem_limit_bytes=48 * 1024 * 1024,
        ),
    )(*operands)


# ---------------------------------------------------------------------------
# Glue: int8 neighbor counts + per-row 1/deg, from edge_index (2, E).
# edge_index[0] = source nodes, edge_index[1] = target nodes.
# Duplicate edges are counted with multiplicity (matches the densified mean).
# ---------------------------------------------------------------------------
def build_adjacency_counts(edge_index, num_nodes_padded):
    src, dst = edge_index[0], edge_index[1]
    # TODO(synk): int8 overflows for multi-edges with multiplicity > 127.
    counts = jnp.zeros((num_nodes_padded, num_nodes_padded), jnp.int8)
    counts = counts.at[dst, src].add(jnp.ones_like(src, dtype=jnp.int8))
    deg = jnp.zeros((num_nodes_padded,), jnp.int32).at[dst].add(1)
    inv_deg = (1.0 / jnp.maximum(deg, 1).astype(jnp.float32)
               ).reshape(num_nodes_padded, 1)
    return counts, inv_deg


def _largest_tile(n_pad, t_max):
    # Largest multiple of 128 that divides n_pad and is <= t_max.
    t = t_max
    while n_pad % t != 0:
        t -= 128
    return t


def _choose_tiles_and_pad(n, tm_max=512, tk_max=1024):
    """Pad N only as far as the tiles require; shrink tiles for small graphs."""
    assert tm_max % 128 == 0 and tk_max % tm_max == 0
    n_pad = _round_up(n, 128)
    if n_pad > tk_max:
        n_pad = _round_up(n_pad, tk_max)
        return n_pad, tm_max, tk_max
    tk = n_pad                             # single contraction step
    tm = _largest_tile(n_pad, tm_max)
    return n_pad, tm, tk


# ---------------------------------------------------------------------------
# SAGE model: parameter init + forward
# ---------------------------------------------------------------------------
def init_sage_params(key, in_channels, hidden_channels, out_channels,
                     num_layers=2):
    dims = [in_channels] + [hidden_channels] * (num_layers - 1) + [out_channels]
    params = []
    for li in range(num_layers):
        fin, fout = dims[li], dims[li + 1]
        key, k1, k2 = jax.random.split(key, 3)
        scale = 1.0 / jnp.sqrt(jnp.float32(fin))
        w_l = jax.random.uniform(k1, (fin, fout), jnp.float32, -scale, scale)
        w_r = jax.random.uniform(k2, (fin, fout), jnp.float32, -scale, scale)
        b = jnp.zeros((1, fout), jnp.float32)  # lin_l bias; lin_r has no bias
        params.append((w_l, w_r, b))
    return params


def sage_forward(params, x, edge_index, *, tm_max=512, tk_max=1024):
    n, f_in = x.shape
    lane = 128
    n_pad, tm, tk = _choose_tiles_and_pad(n, tm_max, tk_max)
    counts, inv_deg = build_adjacency_counts(edge_index, n_pad)

    # Pad features/nodes; padded entries are zero and never reach valid rows.
    fin_p = _round_up(f_in, lane)
    h = jnp.zeros((n_pad, fin_p), jnp.bfloat16).at[:n, :f_in].set(
        x.astype(jnp.bfloat16))

    num_layers = len(params)
    fout_last = f_in
    for li, (w_l, w_r, b) in enumerate(params):
        last = li == num_layers - 1
        fin, fout = w_l.shape
        fin_p, fout_p = _round_up(fin, lane), _round_up(fout, lane)
        w_l_p = jnp.zeros((fin_p, fout_p), jnp.bfloat16).at[:fin, :fout].set(
            w_l.astype(jnp.bfloat16))
        w_r_p = jnp.zeros((fin_p, fout_p), jnp.bfloat16).at[:fin, :fout].set(
            w_r.astype(jnp.bfloat16))
        b_p = jnp.zeros((1, fout_p), jnp.float32).at[:, :fout].set(b)

        h = sage_conv(
            counts, inv_deg, h, w_l_p, w_r_p, b_p,
            apply_relu=not last,
            out_dtype=jnp.float32 if last else jnp.bfloat16,
            project_in_epilogue=(fout >= fin),   # stream the narrower operand
            tm=tm, tk=tk,
        )
        # TODO(synk): F.dropout(p=0.5, training=True) between layers is
        # stochastic; evaluated here in inference mode (identity).
        fout_last = fout
    return h[:n, :fout_last]


# Plain-JAX f32 reference (dense mean aggregation) for a correctness check.
def sage_forward_reference(params, x, edge_index):
    n = x.shape[0]
    src, dst = edge_index[0], edge_index[1]
    a = jnp.zeros((n, n), jnp.float32).at[dst, src].add(1.0)
    a = a / jnp.maximum(a.sum(axis=1, keepdims=True), 1.0)
    h = x
    for i, (w_l, w_r, b) in enumerate(params):
        h = (a @ h) @ w_l + h @ w_r + b
        if i < len(params) - 1:
            h = jnp.maximum(h, 0.0)
    return h


# ---------------------------------------------------------------------------
if __name__ == "__main__":
    key = jax.random.PRNGKey(0)

    num_nodes = 16
    in_channels = 16
    hidden_channels = 32
    out_channels = 8
    num_edges = 48

    k_x, k_src, k_dst, k_params = jax.random.split(key, 4)
    x = jax.random.normal(k_x, (num_nodes, in_channels), jnp.float32)
    src = jax.random.randint(k_src, (num_edges,), 0, num_nodes, jnp.int32)
    dst = jax.random.randint(k_dst, (num_edges,), 0, num_nodes, jnp.int32)
    edge_index = jnp.stack([src, dst], axis=0)     # (2, E)

    params = init_sage_params(
        k_params, in_channels, hidden_channels, out_channels, num_layers=2
    )

    out = sage_forward(params, x, edge_index)
    jax.block_until_ready(out)
    assert out.shape == (num_nodes, out_channels)

    ref = sage_forward_reference(params, x, edge_index)
    max_err = float(jnp.max(jnp.abs(out - ref)))
    assert jnp.allclose(out, ref, atol=5e-2, rtol=5e-2), f"max_err={max_err}"

    print("KERNEL_OK")
</pallas_src>

<mosaic_0001>
module attributes {stable_mosaic.version = 11 : i64} {
  func.func @_sage_kernel_proj(%arg0: i32, %arg1: i32, %arg2: memref<128x128xi8, #tpu.memory_space<vmem>>, %arg3: memref<128x128xbf16, #tpu.memory_space<vmem>>, %arg4: memref<128x128xbf16, #tpu.memory_space<vmem>>, %arg5: memref<128x1xf32, #tpu.memory_space<vmem>>, %arg6: memref<128x128xbf16, #tpu.memory_space<vmem>>, %arg7: memref<128x128xbf16, #tpu.memory_space<vmem>>, %arg8: memref<1x128xf32, #tpu.memory_space<vmem>>, %arg9: memref<128x128xbf16, #tpu.memory_space<vmem>>, %arg10: memref<128x128xf32, #tpu.memory_space<vmem>>, %arg11: memref<128x128xf32, #tpu.memory_space<vmem>>) attributes {dimension_semantics = [#tpu.dimension_semantics<parallel>, #tpu.dimension_semantics<arbitrary>], iteration_bounds = array<i64: 1, 1>, scalar_prefetch = 0 : i64, scratch_operands = 2 : i64, tpu.core_type = #tpu.core_type<tc>, window_params = [{transform_indices = @transform_0, window_bounds = array<i64: 128, 128>}, {transform_indices = @transform_1, window_bounds = array<i64: 128, 128>}, {transform_indices = @transform_2, window_bounds = array<i64: 128, 128>}, {transform_indices = @transform_3, window_bounds = array<i64: 128, 1>}, {pipeline_mode = #tpu.pipeline_mode<synchronous>, transform_indices = @transform_4, window_bounds = array<i64: 128, 128>}, {pipeline_mode = #tpu.pipeline_mode<synchronous>, transform_indices = @transform_5, window_bounds = array<i64: 128, 128>}, {pipeline_mode = #tpu.pipeline_mode<synchronous>, transform_indices = @transform_6, window_bounds = array<i64: 1, 128>}, {transform_indices = @transform_7, window_bounds = array<i64: 128, 128>}]} {
    %c0_i32 = arith.constant 0 : i32
    %0 = arith.cmpi eq, %arg1, %c0_i32 : i32
    %1 = arith.extui %0 : i1 to i32
    %c0_i32_0 = arith.constant 0 : i32
    %2 = arith.cmpi ne, %1, %c0_i32_0 : i32
    scf.if %2 {
      %cst_10 = arith.constant 0.000000e+00 : f32
      %13 = vector.broadcast %cst_10 : f32 to vector<128x128xf32>
      %c0_11 = arith.constant 0 : index
      %c0_12 = arith.constant 0 : index
      %14 = vector.load %arg10[%c0_11, %c0_12] : memref<128x128xf32, #tpu.memory_space<vmem>>, vector<128x128xf32>
      tpu.vector_store %arg10[%c0_11, %c0_12], %13 {strides = array<i32>} : memref<128x128xf32, #tpu.memory_space<vmem>>, vector<128x128xf32>,
      %c0_13 = arith.constant 0 : index
      %c0_14 = arith.constant 0 : index
      %15 = vector.load %arg4[%c0_13, %c0_14] : memref<128x128xbf16, #tpu.memory_space<vmem>>, vector<128x128xbf16>
      %c0_15 = arith.constant 0 : index
      %c0_16 = arith.constant 0 : index
      %16 = vector.load %arg7[%c0_15, %c0_16] : memref<128x128xbf16, #tpu.memory_space<vmem>>, vector<128x128xbf16>
      %cst_17 = arith.constant dense<0.000000e+00> : vector<128x128xf32>
      %17 = tpu.matmul %15, %16, %cst_17 {dimension_numbers = #tpu.dot_dimension_numbers<[1], [0], [0], [1], [0, 0, 1, 1], [], []>} : vector<128x128xbf16>, vector<128x128xbf16>, vector<128x128xf32> -> vector<128x128xf32>
      %c0_18 = arith.constant 0 : index
      %c0_19 = arith.constant 0 : index
      %18 = vector.load %arg8[%c0_18, %c0_19] : memref<1x128xf32, #tpu.memory_space<vmem>>, vector<1x128xf32>
      %19 = vector.broadcast %18 : vector<1x128xf32> to vector<128x128xf32>
      %20 = arith.addf %17, %19 : vector<128x128xf32>
      %c0_20 = arith.constant 0 : index
      %c0_21 = arith.constant 0 : index
      %21 = vector.load %arg11[%c0_20, %c0_21] : memref<128x128xf32, #tpu.memory_space<vmem>>, vector<128x128xf32>
      tpu.vector_store %arg11[%c0_20, %c0_21], %20 {strides = array<i32>} : memref<128x128xf32, #tpu.memory_space<vmem>>, vector<128x128xf32>,
    } else {
    }
    %c0 = arith.constant 0 : index
    %c0_1 = arith.constant 0 : index
    %3 = vector.load %arg10[%c0, %c0_1] : memref<128x128xf32, #tpu.memory_space<vmem>>, vector<128x128xf32>
    %c0_2 = arith.constant 0 : index
    %c0_3 = arith.constant 0 : index
    %4 = vector.load %arg2[%c0_2, %c0_3] : memref<128x128xi8, #tpu.memory_space<vmem>>, vector<128x128xi8>
    %5 = arith.sitofp %4 : vector<128x128xi8> to vector<128x128xbf16>
    %c0_4 = arith.constant 0 : index
    %c0_5 = arith.constant 0 : index
    %6 = vector.load %arg3[%c0_4, %c0_5] : memref<128x128xbf16, #tpu.memory_space<vmem>>, vector<128x128xbf16>
    %cst = arith.constant dense<0.000000e+00> : vector<128x128xf32>
    %7 = tpu.matmul %5, %6, %cst {dimension_numbers = #tpu.dot_dimension_numbers<[1], [0], [0], [1], [0, 0, 1, 1], [], []>} : vector<128x128xbf16>, vector<128x128xbf16>, vector<128x128xf32> -> vector<128x128xf32>
    %8 = arith.addf %3, %7 : vector<128x128xf32>
    %c0_6 = arith.constant 0 : index
    %c0_7 = arith.constant 0 : index
    %9 = vector.load %arg10[%c0_6, %c0_7] : memref<128x128xf32, #tpu.memory_space<vmem>>, vector<128x128xf32>
    tpu.vector_store %arg10[%c0_6, %c0_7], %8 {strides = array<i32>} : memref<128x128xf32, #tpu.memory_space<vmem>>, vector<128x128xf32>,
    %c0_i32_8 = arith.constant 0 : i32
    %10 = arith.cmpi eq, %arg1, %c0_i32_8 : i32
    %11 = arith.extui %10 : i1 to i32
    %c0_i32_9 = arith.constant 0 : i32
    %12 = arith.cmpi ne, %11, %c0_i32_9 : i32
    scf.if %12 {
      %c0_10 = arith.constant 0 : index
      %c0_11 = arith.constant 0 : index
      %13 = vector.load %arg10[%c0_10, %c0_11] : memref<128x128xf32, #tpu.memory_space<vmem>>, vector<128x128xf32>
      %c0_12 = arith.constant 0 : index
      %c0_13 = arith.constant 0 : index
      %14 = vector.load %arg5[%c0_12, %c0_13] : memref<128x1xf32, #tpu.memory_space<vmem>>, vector<128x1xf32>
      %15 = vector.broadcast %14 : vector<128x1xf32> to vector<128x128xf32>
      %16 = arith.mulf %13, %15 : vector<128x128xf32>
      %17 = arith.truncf %16 : vector<128x128xf32> to vector<128x128xbf16>
      %c0_14 = arith.constant 0 : index
      %c0_15 = arith.constant 0 : index
      %18 = vector.load %arg6[%c0_14, %c0_15] : memref<128x128xbf16, #tpu.memory_space<vmem>>, vector<128x128xbf16>
      %cst_16 = arith.constant dense<0.000000e+00> : vector<128x128xf32>
      %19 = tpu.matmul %17, %18, %cst_16 {dimension_numbers = #tpu.dot_dimension_numbers<[1], [0], [0], [1], [0, 0, 1, 1], [], []>} : vector<128x128xbf16>, vector<128x128xbf16>, vector<128x128xf32> -> vector<128x128xf32>
      %c0_17 = arith.constant 0 : index
      %c0_18 = arith.constant 0 : index
      %20 = vector.load %arg11[%c0_17, %c0_18] : memref<128x128xf32, #tpu.memory_space<vmem>>, vector<128x128xf32>
      %21 = arith.addf %20, %19 : vector<128x128xf32>
      %cst_19 = arith.constant 0.000000e+00 : f32
      %22 = vector.broadcast %cst_19 : f32 to vector<128x128xf32>
      %23 = arith.maximumf %21, %22 : vector<128x128xf32>
      %24 = arith.truncf %23 : vector<128x128xf32> to vector<128x128xbf16>
      %c0_20 = arith.constant 0 : index
      %c0_21 = arith.constant 0 : index
      %25 = vector.load %arg9[%c0_20, %c0_21] : memref<128x128xbf16, #tpu.memory_space<vmem>>, vector<128x128xbf16>
      tpu.vector_store %arg9[%c0_20, %c0_21], %24 {strides = array<i32>} : memref<128x128xbf16, #tpu.memory_space<vmem>>, vector<128x128xbf16>,
    } else {
    }
    return
  }
  func.func @transform_0(%arg0: i32, %arg1: i32) -> (i32, i32) {
    %c0_i32 = arith.constant 0 : i32
    return %arg0, %arg1 : i32, i32
  }
  func.func @transform_1(%arg0: i32, %arg1: i32) -> (i32, i32) {
    %c0_i32 = arith.constant 0 : i32
    %c0_i32_0 = arith.constant 0 : i32
    return %arg1, %c0_i32 : i32, i32
  }
  func.func @transform_2(%arg0: i32, %arg1: i32) -> (i32, i32) {
    %c0_i32 = arith.constant 0 : i32
    %c0_i32_0 = arith.constant 0 : i32
    return %arg0, %c0_i32 : i32, i32
  }
  func.func @transform_3(%arg0: i32, %arg1: i32) -> (i32, i32) {
    %c0_i32 = arith.constant 0 : i32
    %c0_i32_0 = arith.constant 0 : i32
    return %arg0, %c0_i32 : i32, i32
  }
  func.func @transform_4(%arg0: i32, %arg1: i32) -> (i32, i32) {
    %c0_i32 = arith.constant 0 : i32
    %c0_i32_0 = arith.constant 0 : i32
    %c0_i32_1 = arith.constant 0 : i32
    return %c0_i32, %c0_i32_0 : i32, i32
  }
  func.func @transform_5(%arg0: i32, %arg1: i32) -> (i32, i32) {
    %c0_i32 = arith.constant 0 : i32
    %c0_i32_0 = arith.constant 0 : i32
    %c0_i32_1 = arith.constant 0 : i32
    return %c0_i32, %c0_i32_0 : i32, i32
  }
  func.func @transform_6(%arg0: i32, %arg1: i32) -> (i32, i32) {
    %c0_i32 = arith.constant 0 : i32
    %c0_i32_0 = arith.constant 0 : i32
    %c0_i32_1 = arith.constant 0 : i32
    return %c0_i32, %c0_i32_0 : i32, i32
  }
  func.func @transform_7(%arg0: i32, %arg1: i32) -> (i32, i32) {
    %c0_i32 = arith.constant 0 : i32
    %c0_i32_0 = arith.constant 0 : i32
    return %arg0, %c0_i32 : i32, i32
  }
}

</mosaic_0001>

<bundles_post_ra>
// kernel: tpu_custom_call.1
= control target key start
LH: loop header
LB: loop body
LE: loop exit
PB: predicated region body
PF: predicated region fallthrough
CT: control target
= control target key end

     0   :  { %12 = vsyncpa [#allocation5], 0  ;;  %s1605_s0 = inlined_call_operand.hbm [shape: s8[128,128], index: 0, kind: input, shape index: {}]   ;;  %s1606_s1 = inlined_call_operand.vmem [shape: bf16[128,128], index: 1, kind: input, shape index: {}]   ;;  %s1607_s2 = inlined_call_operand.vmem [shape: bf16[128,128], index: 2, kind: input, shape index: {}]   ;;  %s1608_s3 = inlined_call_operand.vmem [shape: f32[128,1], index: 3, kind: input, shape index: {}]   ;;  %s1609_s4 = inlined_call_operand.hbm [shape: bf16[128,128], index: 4, kind: input, shape index: {}]   ;;  %s1610_s5 = inlined_call_operand.hbm [shape: bf16[128,128], index: 5, kind: input, shape index: {}]   ;;  %s1611_s6 = inlined_call_operand.vmem [shape: f32[1,128], index: 6, kind: input, shape index: {}]   ;;  %s1612_s7 = inlined_call_operand.hbm [shape: bf16[128,128], index: 7, kind: output, shape index: {}]  }
   0x1   :  { %13 = vsyncpa [#allocation8], 0 }
   0x2   :  { %14 = vsyncpa [#allocation6], 0  ;;  %s1405_s24 = smov [#allocation7]  }
   0x3   :  { %s38_s25 = sshll.u32 %s1405_s24, 4  ;;  %s39_s25 = int_to_ptr.vmem [resolvable:$true] %s38_s25 }
   0x4   :  { %s1327_s26 = scalar_lea.vmem %s39_s25, 1024  ;;  %p1332_p1 = scmp.lt.s32.totalorder %s39_s25, %s39_s25 }
   0x5   :  { %p1328_p0 = scmp.ne.s32.totalorder %s39_s25, %s1327_s26  ;;  %p1333_p2 = scmp.lt.s32.totalorder %s1327_s26, %s1327_s26 }
   0x7   :  { %p1334_p3 = por %p1333_p2, %p1332_p1 }
   0x9   :  { %p1335_p4 = pnand %p1334_p3, %p1328_p0 }
   0xb   :  { %1338 = shalt.err (!%p1335_p4)
}
   0xc   :  { %s1406_s27 = smov 64   ;;  %s1407_s28 = smov 4  }
   0xd   :  { %44 = dma.hbm_to_vmem [thread:$0]  %s1609_s4, 1024, %s39_s25, [#allocation8], %s1406_s27, %s1406_s27, %s1407_s28  }
   0xe   :  { %s1408_s8 = smov [#allocation4]  }
   0xf   :  { %s20_s9 = sshll.u32 %s1408_s8, 4  ;;  %s21_s9 = int_to_ptr.vmem [resolvable:$true] %s20_s9 }
  0x10   :  { %s1347_s10 = scalar_lea.vmem %s21_s9, 512  ;;  %p1352_p6 = scmp.lt.s32.totalorder %s21_s9, %s21_s9 }
  0x11   :  { %p1348_p5 = scmp.ne.s32.totalorder %s21_s9, %s1347_s10  ;;  %p1353_p7 = scmp.lt.s32.totalorder %s1347_s10, %s1347_s10 }
  0x13   :  { %p1354_p8 = por %p1353_p7, %p1352_p6 }
  0x15   :  { %p1355_p9 = pnand %p1354_p8, %p1348_p5 }
  0x17   :  { %1358 = shalt.err (!%p1355_p9)
}
  0x18   :  { %s1409_s11 = smov 128   ;;  %s1410_s12 = smov 8  }
  0x19   :  { %26 = dma.hbm_to_vmem [thread:$0]  %s1605_s0, 512, %s21_s9, [#allocation5], %s1409_s11, %s1409_s11, %s1410_s12  }
  0x1a   :  { %s1411_s15 = smov [#allocation9]  }
  0x1b   :  { %s50_s16 = sshll.u32 %s1411_s15, 4  ;;  %s51_s16 = int_to_ptr.vmem [resolvable:$true] %s50_s16 }
  0x1c   :  { %s1367_s4 = scalar_lea.vmem %s51_s16, 1024  ;;  %p1372_p11 = scmp.lt.s32.totalorder %s51_s16, %s51_s16 }
  0x1d   :  { %p1368_p10 = scmp.ne.s32.totalorder %s51_s16, %s1367_s4  ;;  %p1373_p12 = scmp.lt.s32.totalorder %s1367_s4, %s1367_s4 }
  0x1f   :  { %p1374_p13 = por %p1373_p12, %p1372_p11 }
  0x21   :  { %p1375_p0 = pnand %p1374_p13, %p1368_p10 }
  0x23   :  { %1378 = shalt.err (!%p1375_p0)
}
  0x24   :  { %56 = dma.hbm_to_vmem [thread:$0]  %s1610_s5, 1024, %s51_s16, [#allocation8], %s1406_s27, %s1406_s27, %s1407_s28  }
  0x25   :  { %1399 = dma.done.wait [#allocation5], 512  }
  0x26   :  { %1400 = vsyncadd [#allocation5], 4294966784 }
  0x27   :  { %1401 = dma.done.wait [#allocation8], 2048  }
  0x28   :  { %1402 = vsyncadd [#allocation8], 4294965248  ;;  %v1412_v0 = vmov 0   ;;  %v1287_v1 = vld [vmem:[%s1606_s1 + $0x38] sm:$0xff]   ;;  %v1288_v2 = vld [vmem:[%s1606_s1 + $0x30] sm:$0xff]  }
  0x29   :  { %1286 = vset.pattern.permute.xlu1 %v1412_v0  ;;  %1285 = vset.pattern.permute.xlu0 %v1412_v0  ;;  %v1289_v3 = vld [vmem:[%s1606_s1 + $0x28] sm:$0xff]   ;;  %v1290_v4 = vld [vmem:[%s1606_s1 + $0x20] sm:$0xff]   ;;  %v1291_v11 = vld [vmem:[%s1606_s1 + $0x18] sm:$0xff]  }
  0x2a   :  { %1196 = vmatprep.subr.bf16.mxu1 %v1287_v1  ;;  %v1481_v5 = vld [vmem:[#allocation4] sm:$0xff]  ;;  %v586_v9 = vld [vmem:[%s1608_s3 + $0x48] sm:$0xff]  ;;  %v1292_v12 = vld [vmem:[%s1606_s1 + $0x10] sm:$0xff]  }
  0x2b   :  { %1197 = vmatpush3.bf16.msra.mxu1 %v1287_v1  ;;  %v357_v6 = vunpack.c.l.s8.bf16 %v1481_v5  ;;  %v585_v7 = vld [vmem:[%s1608_s3 + $0x40] sm:$0xff]  ;;  %v578_v10 = vld [vmem:[%s1608_s3 + $0x8] sm:$0xff]  ;;  %v580_v13 = vld [vmem:[%s1608_s3 + $0x18] sm:$0xff]  ;;  %v358_v31 = vunpack.c.h.s8.bf16 %v1481_v5 }
  0x2c   :  { %1198 = vmatprep.subr.bf16.mxu1 %v1288_v2  ;;  %v577_v8 = vld [vmem:[%s1608_s3] sm:$0xff]  ;;  %635 = vperm.xlu1 %1286, %v585_v7   ;;  %v579_v14 = vld [vmem:[%s1608_s3 + $0x10] sm:$0xff]  ;;  %v1295_v15 = vld [vmem:[#allocation9 + $0x38] sm:$0xff]  }
  0x2d   :  { %595 = vperm.xlu0 %1285, %v577_v8   ;;  %1212 = vmatprep.mubr.bf16.mxu1 %v357_v6  ;;  %v1296_v16 = vld [vmem:[#allocation9 + $0x30] sm:$0xff]   ;;  %v1293_v17 = vld [vmem:[%s1606_s1 + $0x8] sm:$0xff]   ;;  %v588_v18 = vld [vmem:[%s1608_s3 + $0x58] sm:$0xff] }
  0x2e   :  { %1164 = vmatprep.subr.bf16.mxu0 %v1295_v15  ;;  %v587_v19 = vld [vmem:[%s1608_s3 + $0x50] sm:$0xff]  ;;  %v1297_v20 = vld [vmem:[#allocation9 + $0x28] sm:$0xff]   ;;  %v1294_v22 = vld [vmem:[%s1606_s1] sm:$0xff]  }
  0x2f   :  { %1199 = vmatpush3.bf16.msra.mxu1 %v1288_v2  ;;  %1165 = vmatpush3.bf16.msra.mxu0 %v1295_v15  ;;  %v582_v21 = vld [vmem:[%s1608_s3 + $0x28] sm:$0xff]  ;;  %v581_v23 = vld [vmem:[%s1608_s3 + $0x20] sm:$0xff]  ;;  %v1299_v29 = vld [vmem:[#allocation9 + $0x18] sm:$0xff]  }
  0x30   :  { %1200 = vmatprep.subr.bf16.mxu1 %v1289_v3  ;;  %640 = vperm.xlu1 %1286, %v586_v9   ;;  %v1303_v24 = vld [vmem:[%s1607_s2] sm:$0xff]   ;;  %v354_v26 = vld [vmem:[#allocation4 + $0x8] sm:$0xff]  ;;  %v584_v30 = vld [vmem:[%s1608_s3 + $0x38] sm:$0xff] }
  0x31   :  { %600 = vperm.xlu0 %1285, %v578_v10   ;;  %1166 = vmatprep.subr.bf16.mxu0 %v1296_v16  ;;  %v1298_v25 = vld [vmem:[#allocation9 + $0x20] sm:$0xff]   ;;  %v590_v27 = vld [vmem:[%s1608_s3 + $0x68] sm:$0xff]  ;;  %v1305_v32 = vld [vmem:[#allocation7 + $0x38] sm:$0xff]   ;;  %v359_v33 = vunpack.c.l.s8.bf16 %v354_v26  ;;  %v360_v41 = vunpack.c.h.s8.bf16 %v354_v26 }
  0x32   :  { %1180 = vmatprep.mubr.bf16.mxu0 %v1303_v24  ;;  %v589_v28 = vld [vmem:[%s1608_s3 + $0x60] sm:$0xff]  ;;  %v583_v34 = vld [vmem:[%s1608_s3 + $0x30] sm:$0xff]  ;;  %v592_v36 = vld [vmem:[%s1608_s3 + $0x78] sm:$0xff] }
  0x33   :  { %1201 = vmatpush3.bf16.msra.mxu1 %v1289_v3  ;;  %1167 = vmatpush3.bf16.msra.mxu0 %v1296_v16  ;;  %v1300_v35 = vld [vmem:[#allocation9 + $0x10] sm:$0xff]   ;;  %v1301_v40 = vld [vmem:[#allocation9 + $0x8] sm:$0xff]   ;;  %v1302_v44 = vld [vmem:[#allocation9] sm:$0xff]  }
  0x34   :  { %1202 = vmatprep.subr.bf16.mxu1 %v1290_v4  ;;  %610 = vperm.xlu1 %1286, %v580_v13   ;;  %v1306_v37 = vld [vmem:[#allocation7 + $0x30] sm:$0xff]   ;;  %v1309_v43 = vld [vmem:[#allocation7 + $0x28] sm:$0xff]   ;;  %v1310_v45 = vld [vmem:[#allocation7 + $0x20] sm:$0xff]  }
  0x35   :  { %605 = vperm.xlu0 %1285, %v579_v14   ;;  %1168 = vmatprep.subr.bf16.mxu0 %v1297_v20  ;;  %v355_v38 = vld [vmem:[#allocation4 + $0x10] sm:$0xff]  ;;  %v356_v46 = vld [vmem:[#allocation4 + $0x18] sm:$0xff]  ;;  %v1304_v49 = vld [vmem:[%s1607_s2 + $0x8] sm:$0xff]  }
  0x36   :  { %v591_v39 = vld [vmem:[%s1608_s3 + $0x70] sm:$0xff]  ;;  %v361_v42 = vunpack.c.l.s8.bf16 %v355_v38  ;;  %v362_v47 = vunpack.c.h.s8.bf16 %v355_v38  ;;  %v363_v48 = vunpack.c.l.s8.bf16 %v356_v46  ;;  %v1313_v50 = vld [vmem:[#allocation7 + $0x18] sm:$0xff]   ;;  %v364_v52 = vunpack.c.h.s8.bf16 %v356_v46  ;;  %v1311_v54 = vld [vmem:[%s1607_s2 + $0x20] sm:$0xff]  }
  0x37   :  { %1203 = vmatpush3.bf16.msra.mxu1 %v1290_v4  ;;  %1169 = vmatpush3.bf16.msra.mxu0 %v1297_v20  ;;  %v1307_v51 = vld [vmem:[%s1607_s2 + $0x10] sm:$0xff]   ;;  %v1308_v53 = vld [vmem:[%s1607_s2 + $0x18] sm:$0xff]   ;;  %v1312_v55 = vld [vmem:[%s1607_s2 + $0x28] sm:$0xff]  }
  0x38   :  { %1204 = vmatprep.subr.bf16.mxu1 %v1291_v11  ;;  %650 = vperm.xlu1 %1286, %v588_v18   ;;  %v1314_v56 = vld [vmem:[#allocation7 + $0x10] sm:$0xff]   ;;  %v1316_v58 = vld [vmem:[%s1607_s2 + $0x38] sm:$0xff]   ;;  %v1317_v59 = vld [vmem:[#allocation7 + $0x8] sm:$0xff]  }
  0x39   :  { %645 = vperm.xlu0 %1285, %v587_v19   ;;  %1170 = vmatprep.subr.bf16.mxu0 %v1298_v25  ;;  %v1315_v57 = vld [vmem:[%s1607_s2 + $0x30] sm:$0xff]   ;;  %v1318_v60 = vld [vmem:[#allocation7] sm:$0xff]  }
  0x3b   :  { %1205 = vmatpush3.bf16.msra.mxu1 %v1291_v11  ;;  %1171 = vmatpush3.bf16.msra.mxu0 %v1298_v25 }
  0x3c   :  { %1206 = vmatprep.subr.bf16.mxu1 %v1292_v12  ;;  %620 = vperm.xlu1 %1286, %v582_v21  }
  0x3d   :  { %615 = vperm.xlu0 %1285, %v581_v23   ;;  %1172 = vmatprep.subr.bf16.mxu0 %v1299_v29 }
  0x3f   :  { %1207 = vmatpush3.bf16.msra.mxu1 %v1292_v12  ;;  %1173 = vmatpush3.bf16.msra.mxu0 %v1299_v29 }
  0x40   :  { %1208 = vmatprep.subr.bf16.mxu1 %v1293_v17  ;;  %660 = vperm.xlu1 %1286, %v590_v27  }
  0x41   :  { %655 = vperm.xlu0 %1285, %v589_v28   ;;  %1174 = vmatprep.subr.bf16.mxu0 %v1300_v35 }
  0x43   :  { %1209 = vmatpush3.bf16.msra.mxu1 %v1293_v17  ;;  %1175 = vmatpush3.bf16.msra.mxu0 %v1300_v35 }
  0x44   :  { %1210 = vmatprep.subr.bf16.mxu1 %v1294_v22  ;;  %630 = vperm.xlu1 %1286, %v584_v30  }
  0x45   :  { %625 = vperm.xlu0 %1285, %v583_v34   ;;  %1176 = vmatprep.subr.bf16.mxu0 %v1301_v40 }
  0x47   :  { %1211 = vmatpush3.bf16.msra.mxu1 %v1294_v22  ;;  %1177 = vmatpush3.bf16.msra.mxu0 %v1301_v40 }
  0x48   :  { %1260 = vmatprep.subr.bf16.mxu1 %v1305_v32  ;;  %670 = vperm.xlu1 %1286, %v592_v36  }
  0x49   :  { %665 = vperm.xlu0 %1285, %v591_v39   ;;  %1178 = vmatprep.subr.bf16.mxu0 %v1302_v44 }
  0x4a   :  { %1213 = vmatmul.mubr.bf16.vlgmr.msra.gmra.mxu1 %v358_v31 }
  0x4b   :  { %1216 = vmatprep.mubr.bf16.mxu1 %v359_v33  ;;  %1268 = vmatpush3.bf16.msra.mxu1 %v1305_v32 }
  0x4c   :  { %1261 = vmatprep.subr.bf16.mxu1 %v1306_v37  ;;  %1179 = vmatpush3.bf16.msra.mxu0 %v1302_v44 }
  0x4d   :  { %1228 = vmatprep.subr.bf16.mxu0 %v1305_v32 }
  0x4f   :  { %1269 = vmatpush3.bf16.msra.mxu1 %v1306_v37  ;;  %1181 = vmatmul.mubr.bf16.vlgmr.msra.gmra.mxu0 %v1304_v49 }
  0x50   :  { %1262 = vmatprep.subr.bf16.mxu1 %v1309_v43  ;;  %1229 = vmatpush3.bf16.msra.mxu0 %v1305_v32 }
  0x51   :  { %1184 = vmatprep.mubr.bf16.mxu0 %v1307_v51  ;;  %1230 = vmatprep.subr.bf16.mxu0 %v1306_v37 }
  0x52   :  { %1217 = vmatmul.mubr.bf16.gmra.mxu1 %v360_v41 }
  0x53   :  { %1220 = vmatprep.mubr.bf16.mxu1 %v361_v42  ;;  %1270 = vmatpush3.bf16.msra.mxu1 %v1309_v43 }
  0x54   :  { %1263 = vmatprep.subr.bf16.mxu1 %v1310_v45  ;;  %1231 = vmatpush3.bf16.msra.mxu0 %v1306_v37 }
  0x55   :  { %1232 = vmatprep.subr.bf16.mxu0 %v1309_v43 }
  0x57   :  { %1271 = vmatpush3.bf16.msra.mxu1 %v1310_v45  ;;  %1185 = vmatmul.mubr.bf16.gmra.mxu0 %v1308_v53 }
  0x58   :  { %1264 = vmatprep.subr.bf16.mxu1 %v1313_v50  ;;  %1233 = vmatpush3.bf16.msra.mxu0 %v1309_v43 }
  0x59   :  { %1188 = vmatprep.mubr.bf16.mxu0 %v1311_v54  ;;  %1234 = vmatprep.subr.bf16.mxu0 %v1310_v45 }
  0x5a   :  { %1221 = vmatmul.mubr.bf16.gmra.mxu1 %v362_v47 }
  0x5b   :  { %1224 = vmatprep.mubr.bf16.mxu1 %v363_v48  ;;  %1272 = vmatpush3.bf16.msra.mxu1 %v1313_v50 }
  0x5c   :  { %1235 = vmatpush3.bf16.msra.mxu0 %v1310_v45  ;;  %1265 = vmatprep.subr.bf16.mxu1 %v1314_v56 }
  0x5d   :  { %1236 = vmatprep.subr.bf16.mxu0 %v1313_v50 }
  0x5f   :  { %1189 = vmatmul.mubr.bf16.gmra.mxu0 %v1312_v55  ;;  %1273 = vmatpush3.bf16.msra.mxu1 %v1314_v56 }
  0x60   :  { %1237 = vmatpush3.bf16.msra.mxu0 %v1313_v50  ;;  %1192 = vmatprep.mubr.bf16.mxu0 %v1315_v57 }
  0x61   :  { %1238 = vmatprep.subr.bf16.mxu0 %v1314_v56  ;;  %1266 = vmatprep.subr.bf16.mxu1 %v1317_v59 }
  0x62   :  { %1225 = vmatmul.mubr.bf16.gmra.mxu1 %v364_v52 }
  0x63   :  { %1274 = vmatpush3.bf16.msra.mxu1 %v1317_v59 }
  0x64   :  { %1239 = vmatpush3.bf16.msra.mxu0 %v1314_v56  ;;  %1267 = vmatprep.subr.bf16.mxu1 %v1318_v60 }
  0x65   :  { %1240 = vmatprep.subr.bf16.mxu0 %v1317_v59 }
  0x67   :  { %1193 = vmatmul.mubr.bf16.gmra.mxu0 %v1316_v58  ;;  %1275 = vmatpush3.bf16.msra.mxu1 %v1318_v60 }
  0x68   :  { %1241 = vmatpush3.bf16.msra.mxu0 %v1317_v59 }
  0x69   :  { %1242 = vmatprep.subr.bf16.mxu0 %v1318_v60 }
  0x6c   :  { %1243 = vmatpush3.bf16.msra.mxu0 %v1318_v60 }
  0xa7   :  { %v636_v61 = vpop.permute.xlu1 %635 }
  0xa8   :  { %v596_v62 = vpop.permute.xlu0 %595 }
  0xab   :  { %v641_v63 = vpop.permute.xlu1 %640 }
  0xac   :  { %v601_v0 = vpop.permute.xlu0 %600 }
  0xaf   :  { %v611_v1 = vpop.permute.xlu1 %610 }
  0xb0   :  { %v606_v2 = vpop.permute.xlu0 %605 }
  0xb3   :  { %v651_v3 = vpop.permute.xlu1 %650 }
  0xb4   :  { %v646_v4 = vpop.permute.xlu0 %645 }
  0xb7   :  { %v621_v6 = vpop.permute.xlu1 %620 }
  0xb8   :  { %v616_v8 = vpop.permute.xlu0 %615 }
  0xbb   :  { %v661_v12 = vpop.permute.xlu1 %660 }
  0xbc   :  { %v656_v17 = vpop.permute.xlu0 %655 }
  0xbf   :  { %v631_v22 = vpop.permute.xlu1 %630 }
  0xc0   :  { %v626_v25 = vpop.permute.xlu0 %625 }
  0xc3   :  { %v671_v44 = vpop.permute.xlu1 %670 }
  0xc4   :  { %v666_v47 = vpop.permute.xlu0 %665 }
 0x10a   :  { %v1214_v5 = vpop.f32.mrf.mxu1 }
 0x10b   :  { %v675_v15 = vmul.f32 %v1214_v5, %v606_v2  ;;  %v1578_v5 = vld [vmem:[%s1611_s6] ss:$0 sm:$0xff]  ;;  %s1413_s6 = smov [#allocation10]  }
 0x10c   :  { %v463_v7 = vpop.f32.mrf.mxu1  ;;  %s991_s10 = sshll.u32 %s1413_s6, 4  ;;  %s992_s10 = int_to_ptr.vmem [resolvable:$true] %s991_s10 }
 0x10d   :  { %v673_v13 = vmul.f32 %v596_v62, %v463_v7  ;;  %s1379_s11 = scalar_lea.vmem %s992_s10, 1024  ;;  %p1384_p2 = scmp.lt.s32.totalorder %s992_s10, %s992_s10 }
 0x10e   :  { %v1215_v9 = vpop.f32.mrf.mxu1  ;;  %p1380_p1 = scmp.ne.s32.totalorder %s992_s10, %s1379_s11  ;;  %p1385_p3 = scmp.lt.s32.totalorder %s1379_s11, %s1379_s11 }
 0x10f   :  { %v676_v10 = vmul.f32 %v1215_v9, %v611_v1  ;;  %v1182_v53 = vpop.f32.mrf.mxu0 }
 0x110   :  { %v466_v11 = vpop.f32.mrf.mxu1  ;;  %v267_v7 = vadd.f32 %v1182_v53, %v1578_v5  ;;  %p1386_p4 = por %p1385_p3, %p1384_p2 }
 0x111   :  { %v674_v14 = vmul.f32 %v601_v0, %v466_v11  ;;  %v690_v19 = vpack.c.bf16 %v676_v10, %v675_v15  ;;  %v258_v54 = vpop.f32.mrf.mxu0 }
 0x112   :  { %v1218_v16 = vpop.f32.mrf.mxu1  ;;  %v259_v9 = vadd.f32 %v1578_v5, %v258_v54  ;;  %p1387_p5 = pnand %p1386_p4, %p1380_p1 }
 0x113   :  { %v689_v18 = vpack.c.bf16 %v674_v14, %v673_v13  ;;  %v679_v28 = vmul.f32 %v1218_v16, %v626_v25  ;;  %v1183_v55 = vpop.f32.mrf.mxu0 }
 0x114   :  { %v479_v20 = vpop.f32.mrf.mxu1  ;;  %v270_v10 = vadd.f32 %v1183_v55, %v1578_v5 }
 0x115   :  { %1244 = vmatprep.mubr.bf16.mxu0 %v689_v18  ;;  %v677_v26 = vmul.f32 %v616_v8, %v479_v20  ;;  %v261_v56 = vpop.f32.mrf.mxu0 }
 0x116   :  { %v1219_v21 = vpop.f32.mrf.mxu1  ;;  %1245 = vmatmul.mubr.bf16.vlgmr.msra.gmra.mxu0 %v690_v19  ;;  %v262_v13 = vadd.f32 %v1578_v5, %v261_v56 }
 0x117   :  { %v680_v23 = vmul.f32 %v1219_v21, %v631_v22  ;;  %v1186_v57 = vpop.f32.mrf.mxu0 }
 0x118   :  { %v482_v24 = vpop.f32.mrf.mxu1  ;;  %v283_v21 = vadd.f32 %v1186_v57, %v1578_v5 }
 0x119   :  { %v678_v27 = vmul.f32 %v621_v6, %v482_v24  ;;  %v692_v31 = vpack.c.bf16 %v680_v23, %v679_v28  ;;  %v274_v58 = vpop.f32.mrf.mxu0 }
 0x11a   :  { %v1222_v29 = vpop.f32.mrf.mxu1 }
 0x11b   :  { %v691_v30 = vpack.c.bf16 %v678_v27, %v677_v26  ;;  %v683_v38 = vmul.f32 %v1222_v29, %v646_v4  ;;  %v1187_v59 = vpop.f32.mrf.mxu0  ;;  %v275_v26 = vadd.f32 %v1578_v5, %v274_v58 }
 0x11c   :  { %v495_v32 = vpop.f32.mrf.mxu1  ;;  %v286_v27 = vadd.f32 %v1187_v59, %v1578_v5 }
 0x11d   :  { %1248 = vmatprep.mubr.bf16.mxu0 %v691_v30  ;;  %v681_v36 = vmul.f32 %v636_v61, %v495_v32  ;;  %v277_v60 = vpop.f32.mrf.mxu0 }
 0x11e   :  { %v1223_v33 = vpop.f32.mrf.mxu1  ;;  %1249 = vmatmul.mubr.bf16.gmra.mxu0 %v692_v31  ;;  %v278_v31 = vadd.f32 %v1578_v5, %v277_v60 }
 0x11f   :  { %v684_v34 = vmul.f32 %v1223_v33, %v651_v3  ;;  %v1190_v61 = vpop.f32.mrf.mxu0 }
 0x120   :  { %v498_v35 = vpop.f32.mrf.mxu1 }
 0x121   :  { %v682_v37 = vmul.f32 %v641_v63, %v498_v35  ;;  %v694_v41 = vpack.c.bf16 %v684_v34, %v683_v38  ;;  %v290_v62 = vpop.f32.mrf.mxu0 }
 0x122   :  { %v1226_v39 = vpop.f32.mrf.mxu1 }
 0x123   :  { %v693_v40 = vpack.c.bf16 %v682_v37, %v681_v36  ;;  %v687_v50 = vmul.f32 %v1226_v39, %v666_v47  ;;  %v1191_v63 = vpop.f32.mrf.mxu0  ;;  %v299_v39 = vadd.f32 %v1190_v61, %v1578_v5 }
 0x124   :  { %v511_v42 = vpop.f32.mrf.mxu1 }
 0x125   :  { %1252 = vmatprep.mubr.bf16.mxu1 %v693_v40  ;;  %v685_v48 = vmul.f32 %v656_v17, %v511_v42  ;;  %v293_v0 = vpop.f32.mrf.mxu0 }
 0x126   :  { %v1227_v43 = vpop.f32.mrf.mxu1  ;;  %1253 = vmatmul.mubr.bf16.vlgmr.msra.gmra.mxu1 %v694_v41 }
 0x127   :  { %v688_v45 = vmul.f32 %v1227_v43, %v671_v44  ;;  %v1194_v1 = vpop.f32.mrf.mxu0  ;;  %v291_v44 = vadd.f32 %v1578_v5, %v290_v62 }
 0x128   :  { %v514_v46 = vpop.f32.mrf.mxu1  ;;  %v315_v57 = vadd.f32 %v1194_v1, %v1578_v5 }
 0x129   :  { %v686_v49 = vmul.f32 %v661_v12, %v514_v46  ;;  %v696_v52 = vpack.c.bf16 %v688_v45, %v687_v50  ;;  %v1569_v2 = vpop.f32.mrf.mxu0  ;;  %v302_v45 = vadd.f32 %v1191_v63, %v1578_v5 }
 0x12a   :  { %v307_v62 = vadd.f32 %v1578_v5, %v1569_v2 }
 0x12b   :  { %v695_v51 = vpack.c.bf16 %v686_v49, %v685_v48  ;;  %v1571_v3 = vpop.f32.mrf.mxu0  ;;  %v294_v49 = vadd.f32 %v1578_v5, %v293_v0 }
 0x12c   :  { %v318_v63 = vadd.f32 %v1571_v3, %v1578_v5 }
 0x12d   :  { %1256 = vmatprep.mubr.bf16.mxu1 %v695_v51  ;;  %v1573_v4 = vpop.f32.mrf.mxu0 }
 0x12e   :  { %1257 = vmatmul.mubr.bf16.gmra.mxu1 %v696_v52 }
 0x1d6   :  { %v1246_v6 = vpop.f32.mrf.mxu0 }
 0x1d7   :  { %v876_v11 = vadd.f32 %v1246_v6, %v267_v7 }
 0x1d8   :  { %v795_v8 = vpop.f32.mrf.mxu0 }
 0x1d9   :  { %v874_v14 = vadd.f32 %v795_v8, %v259_v9  ;;  %v892_v17 = vmax.f32 %v876_v11, 0.0  ;;  %v310_v8 = vadd.f32 %v1578_v5, %v1573_v4 }
 0x1da   :  { %v1247_v12 = vpop.f32.mrf.mxu0 }
 0x1db   :  { %v877_v15 = vadd.f32 %v1247_v12, %v270_v10  ;;  %v890_v22 = vmax.f32 %v874_v14, 0.0 }
 0x1dc   :  { %v798_v16 = vpop.f32.mrf.mxu0 }
 0x1dd   :  { %v893_v18 = vmax.f32 %v877_v15, 0.0  ;;  %v875_v19 = vadd.f32 %v798_v16, %v262_v13 }
 0x1de   :  { %v1250_v20 = vpop.f32.mrf.mxu0 }
 0x1df   :  { %v1077_v23 = vpack.c.bf16 %v893_v18, %v892_v17  ;;  %v891_v24 = vmax.f32 %v875_v19, 0.0  ;;  %v880_v29 = vadd.f32 %v1250_v20, %v283_v21 }
 0x1e0   :  { %v811_v25 = vpop.f32.mrf.mxu0 }
 0x1e1   :  { %1109 = vst [vmem:[#allocation10 + $0x8] sm:$0xff] %v1077_v23   ;;  %v1072_v28 = vpack.c.bf16 %v891_v24, %v890_v22  ;;  %v878_v32 = vadd.f32 %v811_v25, %v275_v26  ;;  %v896_v35 = vmax.f32 %v880_v29, 0.0 }
 0x1e2   :  { %v1251_v30 = vpop.f32.mrf.mxu0 }
 0x1e3   :  { %1073 = vst [vmem:[#allocation10] sm:$0xff] %v1072_v28   ;;  %v881_v33 = vadd.f32 %v1251_v30, %v286_v27  ;;  %v894_v40 = vmax.f32 %v878_v32, 0.0 }
 0x1e4   :  { %v814_v34 = vpop.f32.mrf.mxu0 }
 0x1e5   :  { %v897_v36 = vmax.f32 %v881_v33, 0.0  ;;  %v879_v37 = vadd.f32 %v814_v34, %v278_v31 }
 0x1e6   :  { %v1254_v38 = vpop.f32.mrf.mxu1 }
 0x1e7   :  { %v1087_v41 = vpack.c.bf16 %v897_v36, %v896_v35  ;;  %v895_v42 = vmax.f32 %v879_v37, 0.0  ;;  %v884_v47 = vadd.f32 %v1254_v38, %v299_v39 }
 0x1e8   :  { %v827_v43 = vpop.f32.mrf.mxu1 }
 0x1e9   :  { %1111 = vst [vmem:[#allocation10 + $0x18] sm:$0xff] %v1087_v41   ;;  %v1082_v46 = vpack.c.bf16 %v895_v42, %v894_v40  ;;  %v882_v50 = vadd.f32 %v827_v43, %v291_v44  ;;  %v900_v53 = vmax.f32 %v884_v47, 0.0 }
 0x1ea   :  { %v1255_v48 = vpop.f32.mrf.mxu1 }
 0x1eb   :  { %1110 = vst [vmem:[#allocation10 + $0x10] sm:$0xff] %v1082_v46   ;;  %v885_v51 = vadd.f32 %v1255_v48, %v302_v45  ;;  %v898_v58 = vmax.f32 %v882_v50, 0.0 }
 0x1ec   :  { %v830_v52 = vpop.f32.mrf.mxu1 }
 0x1ed   :  { %v901_v54 = vmax.f32 %v885_v51, 0.0  ;;  %v883_v55 = vadd.f32 %v830_v52, %v294_v49 }
 0x1ee   :  { %v1258_v56 = vpop.f32.mrf.mxu1 }
 0x1ef   :  { %v1097_v59 = vpack.c.bf16 %v901_v54, %v900_v53  ;;  %v899_v60 = vmax.f32 %v883_v55, 0.0  ;;  %v888_v6 = vadd.f32 %v1258_v56, %v315_v57 }
 0x1f0   :  { %v843_v61 = vpop.f32.mrf.mxu1 }
 0x1f1   :  { %1113 = vst [vmem:[#allocation10 + $0x28] sm:$0xff] %v1097_v59   ;;  %v1092_v0 = vpack.c.bf16 %v899_v60, %v898_v58  ;;  %v886_v9 = vadd.f32 %v843_v61, %v307_v62  ;;  %v904_v11 = vmax.f32 %v888_v6, 0.0 }
 0x1f2   :  { %v1259_v7 = vpop.f32.mrf.mxu1 }
 0x1f3   :  { %1112 = vst [vmem:[#allocation10 + $0x20] sm:$0xff] %v1092_v0   ;;  %v889_v1 = vadd.f32 %v1259_v7, %v318_v63  ;;  %v902_v2 = vmax.f32 %v886_v9, 0.0 }
 0x1f4   :  { %v846_v10 = vpop.f32.mrf.mxu1 }
 0x1f5   :  { %v905_v12 = vmax.f32 %v889_v1, 0.0  ;;  %v887_v13 = vadd.f32 %v846_v10, %v310_v8 }
 0x1f7   :  { %v1107_v14 = vpack.c.bf16 %v905_v12, %v904_v11  ;;  %v903_v15 = vmax.f32 %v887_v13, 0.0 }
 0x1f9   :  { %1115 = vst [vmem:[#allocation10 + $0x38] sm:$0xff] %v1107_v14   ;;  %v1102_v3 = vpack.c.bf16 %v903_v15, %v902_v2 }
 0x1fb   :  { %1114 = vst [vmem:[#allocation10 + $0x30] sm:$0xff] %v1102_v3  }
 0x1fc   :  { %1390 = shalt.err (!%p1387_p5)
}
 0x1fd   :  { %997 = dma.vmem_to_hbm [thread:$0]  %s992_s10, 1024, %s1612_s7, [#allocation6], %s1406_s27, %s1406_s27, %s1407_s28  }
 0x1fe   :  { %1403 = dma.done.wait [#allocation6], 1024  }
 0x1ff   :  { %1404 = vsyncadd [#allocation6], 4294966272 }
 0x200   :  { %1001 = vsyncpa [#allocation5], 1 }
 0x201   :  { %1002 = vsyncpa [#allocation8], 1 }
 0x202   :  { %1003 = vsyncpa [#allocation6], 1 }

</bundles_post_ra>
